<compile_context>
chip_gen: v7x
topology: tpu7x:2x2x1
jax: 0.10.0
libtpu: 0.0.40
codegen_flags: <defaults>
</compile_context>

<pallas_src>
import functools

import jax
import jax.numpy as jnp
from jax.experimental import pallas as pl
from jax.experimental.pallas import tpu as pltpu


HIDDEN = 32  # fc1/fc2 width, fixed by the module definition


def _embedding_kernel(
    x1_ref, x2_ref,            # [TMf, fold*obs] folded row tiles of x1 / x2
    w1_ref, b1_ref,            # [fold*obs, fold*32], [1, fold*32]  (block-diag fc1)
    w2_ref, b2_ref,            # [fold*32, fold*32],  [1, fold*32]  (block-diag fc2)
    wla_ref, wlb_ref, bl_ref,  # [fold*32, fold*no] x2, [1, fold*no] (block-diag last)
    o_ref,                     # [TMf, fold*no]
    *, fold, num_outputs,
):
    w1 = w1_ref[...]
    w2 = w2_ref[...]
    wla = wla_ref[...]
    wlb = wlb_ref[...]
    b1 = b1_ref[...]
    b2 = b2_ref[...]
    bl = bl_ref[...]
    cd = w1.dtype  # compute dtype of matmul operands (f32 or opt-in bf16)

    def embed(x):
        # folded 2-layer MLP; block-diag weights keep folded rows independent
        h = jnp.dot(x.astype(cd), w1, preferred_element_type=jnp.float32) + b1
        h = jnp.maximum(h, 0.0)
        h = jnp.dot(h.astype(cd), w2, preferred_element_type=jnp.float32) + b2
        return jnp.maximum(h, 0.0)

    e1 = embed(x1_ref[...].astype(jnp.float32))
    e2 = embed(x2_ref[...].astype(jnp.float32))

    # `last` on concat([e1,e2],-1): split into the two weight halves so no
    # in-kernel concatenation / relayout of activations is needed.
    logits = (jnp.dot(e1.astype(cd), wla, preferred_element_type=jnp.float32)
              + jnp.dot(e2.astype(cd), wlb, preferred_element_type=jnp.float32)
              + bl)

    # Grouped (per logical row) numerically-stable softmax over each
    # `num_outputs`-wide lane group.  Static lane slices, unrolled over fold.
    no = num_outputs
    outs = []
    for g in range(fold):
        lg = logits[:, g * no:(g + 1) * no]
        m = jnp.max(lg, axis=-1, keepdims=True)
        e = jnp.exp(lg - m)
        s = jnp.sum(e, axis=-1, keepdims=True)
        # approx=False keeps the 1e-5 tolerance vs the reference
        outs.append(e * pl.reciprocal(s, approx=False))
    o_ref[...] = jnp.concatenate(outs, axis=1).astype(o_ref.dtype)


@functools.partial(jax.jit, static_argnames=("tile_rows", "fold", "use_bf16"))
def embedding_model_forward(x1, x2, params, *, tile_rows=4096, fold=4,
                            use_bf16=False):
    """x1, x2: [B, S, obs_size] float32.  Returns [B, S, num_outputs] float32."""
    w1, b1, w2, b2, wl, bl = (
        params["w1"], params["b1"], params["w2"], params["b2"],
        params["wl"], params["bl"],
    )
    B, S, obs = x1.shape
    H = w1.shape[1]                    # 32
    no = wl.shape[1]                   # num_outputs
    R = B * S
    fold = max(1, int(fold))

    # --- activations: free reshapes; pad only to a multiple of `fold` --------
    x1r = x1.reshape(R, obs)
    x2r = x2.reshape(R, obs)
    R_pad = ((R + fold - 1) // fold) * fold
    if R_pad != R:                     # at most fold-1 zero rows
        pad = ((0, R_pad - R), (0, 0))
        x1r = jnp.pad(x1r, pad)
        x2r = jnp.pad(x2r, pad)
    rf = R_pad // fold                 # folded row count
    x1f = x1r.reshape(rf, fold * obs)
    x2f = x2r.reshape(rf, fold * obs)

    # --- fold-replicated block-diagonal weights (tiny, built once per call) --
    eye = jnp.eye(fold, dtype=w1.dtype)
    w1f = jnp.kron(eye, w1)            # (fold*obs, fold*H)
    w2f = jnp.kron(eye, w2)            # (fold*H,   fold*H)
    wlaf = jnp.kron(eye, wl[:H])       # (fold*H,   fold*no)  -> e1 half of `last`
    wlbf = jnp.kron(eye, wl[H:])       # (fold*H,   fold*no)  -> e2 half of `last`
    b1f = jnp.tile(b1, fold).reshape(1, fold * H)
    b2f = jnp.tile(b2, fold).reshape(1, fold * H)
    blf = jnp.tile(bl, fold).reshape(1, fold * no)

    if use_bf16:                       # opt-in: fewer MXU precision passes
        w1f, w2f, wlaf, wlbf = (a.astype(jnp.bfloat16)
                                for a in (w1f, w2f, wlaf, wlbf))

    # --- folded-row tile sizing ----------------------------------------------
    tmf = max(8, (tile_rows // fold // 8) * 8)       # target folded rows / step
    if rf >= 8:
        tmf = min(tmf, (rf // 8) * 8)                # never exceed the array
        if rf >= 16:                                 # >=2 grid steps (megacore)
            tmf = min(tmf, max(8, (((rf + 1) // 2) // 8) * 8))
    else:
        tmf = rf                                     # tiny problem: one block
    grid = (pl.cdiv(rf, tmf),)                       # masked edge block if needed

    kern = functools.partial(_embedding_kernel, fold=fold, num_outputs=no)

    def row_spec(width):
        return pl.BlockSpec((tmf, width), lambda i: (i, 0))

    def full(shape):
        return pl.BlockSpec(shape, lambda i: (0, 0))

    out = pl.pallas_call(
        kern,
        out_shape=jax.ShapeDtypeStruct((rf, fold * no), jnp.float32),
        grid_spec=pltpu.PrefetchScalarGridSpec(
            num_scalar_prefetch=0,
            grid=grid,
            in_specs=[
                row_spec(fold * obs),        # x1 folded tile
                row_spec(fold * obs),        # x2 folded tile
                full(w1f.shape), full(b1f.shape),
                full(w2f.shape), full(b2f.shape),
                full(wlaf.shape), full(wlbf.shape), full(blf.shape),
            ],
            out_specs=pl.BlockSpec((tmf, fold * no), lambda i: (i, 0)),
        ),
        compiler_params=pltpu.CompilerParams(
            dimension_semantics=("parallel",),   # shard row loop across v7x TCs
            vmem_limit_bytes=32 * 1024 * 1024,   # pipeline needs < 10 MiB
        ),
    )(x1f, x2f, w1f, b1f, w2f, b2f, wlaf, wlbf, blf)

    return out.reshape(R_pad, no)[:R].reshape(B, S, no)


def init_params(key, obs_size, num_outputs):
    """Deterministic synthetic parameters (shapes match the nn.Module)."""
    k1, k2, k3 = jax.random.split(key, 3)
    scale = 0.1
    return {
        "w1": scale * jax.random.normal(k1, (obs_size, HIDDEN), jnp.float32),
        "b1": jnp.zeros((HIDDEN,), jnp.float32),
        "w2": scale * jax.random.normal(k2, (HIDDEN, HIDDEN), jnp.float32),
        "b2": jnp.zeros((HIDDEN,), jnp.float32),
        "wl": scale * jax.random.normal(k3, (2 * HIDDEN, num_outputs), jnp.float32),
        "bl": jnp.zeros((num_outputs,), jnp.float32),
    }


def _reference_forward(x1, x2, params):
    """Pure-JAX reference mirroring the PyTorch forward."""
    def embed(x):
        h = jax.nn.relu(x @ params["w1"] + params["b1"])
        h = jax.nn.relu(h @ params["w2"] + params["b2"])
        return h
    z = jnp.concatenate([embed(x1), embed(x2)], axis=2)
    logits = z @ params["wl"] + params["bl"]
    return jax.nn.softmax(logits, axis=2)


if __name__ == "__main__":
    # TODO(synk): train_model/optimizer (Adam, MSE backward) are host-side
    # training logic, not part of the forward pass; only forward is implemented.
    B, S, obs_size, num_outputs = 2, 8, 16, 4

    key = jax.random.PRNGKey(0)
    kx1, kx2, kp = jax.random.split(key, 3)
    x1 = jax.random.normal(kx1, (B, S, obs_size), jnp.float32)
    x2 = jax.random.normal(kx2, (B, S, obs_size), jnp.float32)
    params = init_params(kp, obs_size, num_outputs)

    out = jax.block_until_ready(embedding_model_forward(x1, x2, params))
    ref = _reference_forward(x1, x2, params)
    assert out.shape == (B, S, num_outputs)
    assert jnp.allclose(out, ref, atol=1e-5, rtol=1e-5), "mismatch vs reference"

    # non-fold-divisible row count: exercises the small remainder pad + the
    # multi-step grid with a masked edge block
    B2, S2 = 7, 37
    x1b = jax.random.normal(jax.random.PRNGKey(1), (B2, S2, obs_size), jnp.float32)
    x2b = jax.random.normal(jax.random.PRNGKey(2), (B2, S2, obs_size), jnp.float32)
    out_b = jax.block_until_ready(
        embedding_model_forward(x1b, x2b, params, tile_rows=128))
    ref_b = _reference_forward(x1b, x2b, params)
    assert jnp.allclose(out_b, ref_b, atol=1e-5, rtol=1e-5), "mismatch (edge path)"

    # larger, fold/tile-divisible case: exercises the >=2-step parallel grid
    B3, S3 = 4, 512
    x1c = jax.random.normal(jax.random.PRNGKey(3), (B3, S3, obs_size), jnp.float32)
    x2c = jax.random.normal(jax.random.PRNGKey(4), (B3, S3, obs_size), jnp.float32)
    out_c = jax.block_until_ready(embedding_model_forward(x1c, x2c, params))
    ref_c = _reference_forward(x1c, x2c, params)
    assert jnp.allclose(out_c, ref_c, atol=1e-5, rtol=1e-5), "mismatch (large path)"

    # opt-in bf16 matmul operands (looser tolerance by design)
    out_bf = jax.block_until_ready(
        embedding_model_forward(x1, x2, params, use_bf16=True))
    assert jnp.allclose(out_bf, ref, atol=3e-2, rtol=0), "mismatch (bf16 opt-in)"

    print("KERNEL_OK")
</pallas_src>

<mosaic_0001>
module attributes {stable_mosaic.version = 11 : i64} {
  func.func @_embedding_kernel(%arg0: i32, %arg1: memref<4x64xf32, #tpu.memory_space<vmem>>, %arg2: memref<4x64xf32, #tpu.memory_space<vmem>>, %arg3: memref<64x128xf32, #tpu.memory_space<vmem>>, %arg4: memref<1x128xf32, #tpu.memory_space<vmem>>, %arg5: memref<128x128xf32, #tpu.memory_space<vmem>>, %arg6: memref<1x128xf32, #tpu.memory_space<vmem>>, %arg7: memref<128x16xf32, #tpu.memory_space<vmem>>, %arg8: memref<128x16xf32, #tpu.memory_space<vmem>>, %arg9: memref<1x16xf32, #tpu.memory_space<vmem>>, %arg10: memref<4x16xf32, #tpu.memory_space<vmem>>) attributes {dimension_semantics = [#tpu.dimension_semantics<parallel>], iteration_bounds = array<i64: 1>, scalar_prefetch = 0 : i64, scratch_operands = 0 : i64, tpu.core_type = #tpu.core_type<tc>, window_params = [{transform_indices = @transform_0, window_bounds = array<i64: 4, 64>}, {transform_indices = @transform_1, window_bounds = array<i64: 4, 64>}, {pipeline_mode = #tpu.pipeline_mode<synchronous>, transform_indices = @transform_2, window_bounds = array<i64: 64, 128>}, {pipeline_mode = #tpu.pipeline_mode<synchronous>, transform_indices = @transform_3, window_bounds = array<i64: 1, 128>}, {pipeline_mode = #tpu.pipeline_mode<synchronous>, transform_indices = @transform_4, window_bounds = array<i64: 128, 128>}, {pipeline_mode = #tpu.pipeline_mode<synchronous>, transform_indices = @transform_5, window_bounds = array<i64: 1, 128>}, {pipeline_mode = #tpu.pipeline_mode<synchronous>, transform_indices = @transform_6, window_bounds = array<i64: 128, 16>}, {pipeline_mode = #tpu.pipeline_mode<synchronous>, transform_indices = @transform_7, window_bounds = array<i64: 128, 16>}, {pipeline_mode = #tpu.pipeline_mode<synchronous>, transform_indices = @transform_8, window_bounds = array<i64: 1, 16>}, {transform_indices = @transform_9, window_bounds = array<i64: 4, 16>}]} {
    %c0 = arith.constant 0 : index
    %c0_0 = arith.constant 0 : index
    %0 = vector.load %arg3[%c0, %c0_0] : memref<64x128xf32, #tpu.memory_space<vmem>>, vector<64x128xf32>
    %c0_1 = arith.constant 0 : index
    %c0_2 = arith.constant 0 : index
    %1 = vector.load %arg5[%c0_1, %c0_2] : memref<128x128xf32, #tpu.memory_space<vmem>>, vector<128x128xf32>
    %c0_3 = arith.constant 0 : index
    %c0_4 = arith.constant 0 : index
    %2 = vector.load %arg7[%c0_3, %c0_4] : memref<128x16xf32, #tpu.memory_space<vmem>>, vector<128x16xf32>
    %c0_5 = arith.constant 0 : index
    %c0_6 = arith.constant 0 : index
    %3 = vector.load %arg8[%c0_5, %c0_6] : memref<128x16xf32, #tpu.memory_space<vmem>>, vector<128x16xf32>
    %c0_7 = arith.constant 0 : index
    %c0_8 = arith.constant 0 : index
    %4 = vector.load %arg4[%c0_7, %c0_8] : memref<1x128xf32, #tpu.memory_space<vmem>>, vector<1x128xf32>
    %c0_9 = arith.constant 0 : index
    %c0_10 = arith.constant 0 : index
    %5 = vector.load %arg6[%c0_9, %c0_10] : memref<1x128xf32, #tpu.memory_space<vmem>>, vector<1x128xf32>
    %c0_11 = arith.constant 0 : index
    %c0_12 = arith.constant 0 : index
    %6 = vector.load %arg9[%c0_11, %c0_12] : memref<1x16xf32, #tpu.memory_space<vmem>>, vector<1x16xf32>
    %c0_13 = arith.constant 0 : index
    %c0_14 = arith.constant 0 : index
    %7 = vector.load %arg1[%c0_13, %c0_14] : memref<4x64xf32, #tpu.memory_space<vmem>>, vector<4x64xf32>
    %cst = arith.constant dense<0.000000e+00> : vector<4x128xf32>
    %8 = tpu.matmul %7, %0, %cst {dimension_numbers = #tpu.dot_dimension_numbers<[1], [0], [0], [1], [0, 0, 1, 1], [], []>} : vector<4x64xf32>, vector<64x128xf32>, vector<4x128xf32> -> vector<4x128xf32>
    %9 = vector.broadcast %4 : vector<1x128xf32> to vector<4x128xf32>
    %10 = arith.addf %8, %9 : vector<4x128xf32>
    %cst_15 = arith.constant 0.000000e+00 : f32
    %11 = vector.broadcast %cst_15 : f32 to vector<4x128xf32>
    %12 = arith.maximumf %10, %11 : vector<4x128xf32>
    %cst_16 = arith.constant dense<0.000000e+00> : vector<4x128xf32>
    %13 = tpu.matmul %12, %1, %cst_16 {dimension_numbers = #tpu.dot_dimension_numbers<[1], [0], [0], [1], [0, 0, 1, 1], [], []>} : vector<4x128xf32>, vector<128x128xf32>, vector<4x128xf32> -> vector<4x128xf32>
    %14 = vector.broadcast %5 : vector<1x128xf32> to vector<4x128xf32>
    %15 = arith.addf %13, %14 : vector<4x128xf32>
    %cst_17 = arith.constant 0.000000e+00 : f32
    %16 = vector.broadcast %cst_17 : f32 to vector<4x128xf32>
    %17 = arith.maximumf %15, %16 : vector<4x128xf32>
    %c0_18 = arith.constant 0 : index
    %c0_19 = arith.constant 0 : index
    %18 = vector.load %arg2[%c0_18, %c0_19] : memref<4x64xf32, #tpu.memory_space<vmem>>, vector<4x64xf32>
    %cst_20 = arith.constant dense<0.000000e+00> : vector<4x128xf32>
    %19 = tpu.matmul %18, %0, %cst_20 {dimension_numbers = #tpu.dot_dimension_numbers<[1], [0], [0], [1], [0, 0, 1, 1], [], []>} : vector<4x64xf32>, vector<64x128xf32>, vector<4x128xf32> -> vector<4x128xf32>
    %20 = vector.broadcast %4 : vector<1x128xf32> to vector<4x128xf32>
    %21 = arith.addf %19, %20 : vector<4x128xf32>
    %cst_21 = arith.constant 0.000000e+00 : f32
    %22 = vector.broadcast %cst_21 : f32 to vector<4x128xf32>
    %23 = arith.maximumf %21, %22 : vector<4x128xf32>
    %cst_22 = arith.constant dense<0.000000e+00> : vector<4x128xf32>
    %24 = tpu.matmul %23, %1, %cst_22 {dimension_numbers = #tpu.dot_dimension_numbers<[1], [0], [0], [1], [0, 0, 1, 1], [], []>} : vector<4x128xf32>, vector<128x128xf32>, vector<4x128xf32> -> vector<4x128xf32>
    %25 = vector.broadcast %5 : vector<1x128xf32> to vector<4x128xf32>
    %26 = arith.addf %24, %25 : vector<4x128xf32>
    %cst_23 = arith.constant 0.000000e+00 : f32
    %27 = vector.broadcast %cst_23 : f32 to vector<4x128xf32>
    %28 = arith.maximumf %26, %27 : vector<4x128xf32>
    %cst_24 = arith.constant dense<0.000000e+00> : vector<4x16xf32>
    %29 = tpu.matmul %17, %2, %cst_24 {dimension_numbers = #tpu.dot_dimension_numbers<[1], [0], [0], [1], [0, 0, 1, 1], [], []>} : vector<4x128xf32>, vector<128x16xf32>, vector<4x16xf32> -> vector<4x16xf32>
    %cst_25 = arith.constant dense<0.000000e+00> : vector<4x16xf32>
    %30 = tpu.matmul %28, %3, %cst_25 {dimension_numbers = #tpu.dot_dimension_numbers<[1], [0], [0], [1], [0, 0, 1, 1], [], []>} : vector<4x128xf32>, vector<128x16xf32>, vector<4x16xf32> -> vector<4x16xf32>
    %31 = arith.addf %29, %30 : vector<4x16xf32>
    %32 = vector.broadcast %6 : vector<1x16xf32> to vector<4x16xf32>
    %33 = arith.addf %31, %32 : vector<4x16xf32>
    %34 = vector.extract_strided_slice %33 {offsets = [0, 0], sizes = [4, 4], strides = [1, 1]} : vector<4x16xf32> to vector<4x4xf32>
    %cst_26 = arith.constant dense<0xFF800000> : vector<4xf32>
    %35 = vector.multi_reduction <maximumf>, %34, %cst_26 [1] : vector<4x4xf32> to vector<4xf32>
    %36 = vector.shape_cast %35 : vector<4xf32> to vector<4x1xf32>
    %37 = vector.broadcast %36 : vector<4x1xf32> to vector<4x4xf32>
    %38 = arith.subf %34, %37 : vector<4x4xf32>
    %39 = math.exp %38 : vector<4x4xf32>
    %cst_27 = arith.constant dense<0.000000e+00> : vector<4xf32>
    %40 = vector.multi_reduction <add>, %39, %cst_27 [1] : vector<4x4xf32> to vector<4xf32>
    %41 = vector.shape_cast %40 : vector<4xf32> to vector<4x1xf32>
    %42 = tpu.reciprocal %41 : vector<4x1xf32> -> vector<4x1xf32>
    %43 = vector.broadcast %42 : vector<4x1xf32> to vector<4x4xf32>
    %44 = arith.mulf %39, %43 : vector<4x4xf32>
    %45 = vector.extract_strided_slice %33 {offsets = [0, 4], sizes = [4, 4], strides = [1, 1]} : vector<4x16xf32> to vector<4x4xf32>
    %cst_28 = arith.constant dense<0xFF800000> : vector<4xf32>
    %46 = vector.multi_reduction <maximumf>, %45, %cst_28 [1] : vector<4x4xf32> to vector<4xf32>
    %47 = vector.shape_cast %46 : vector<4xf32> to vector<4x1xf32>
    %48 = vector.broadcast %47 : vector<4x1xf32> to vector<4x4xf32>
    %49 = arith.subf %45, %48 : vector<4x4xf32>
    %50 = math.exp %49 : vector<4x4xf32>
    %cst_29 = arith.constant dense<0.000000e+00> : vector<4xf32>
    %51 = vector.multi_reduction <add>, %50, %cst_29 [1] : vector<4x4xf32> to vector<4xf32>
    %52 = vector.shape_cast %51 : vector<4xf32> to vector<4x1xf32>
    %53 = tpu.reciprocal %52 : vector<4x1xf32> -> vector<4x1xf32>
    %54 = vector.broadcast %53 : vector<4x1xf32> to vector<4x4xf32>
    %55 = arith.mulf %50, %54 : vector<4x4xf32>
    %56 = vector.extract_strided_slice %33 {offsets = [0, 8], sizes = [4, 4], strides = [1, 1]} : vector<4x16xf32> to vector<4x4xf32>
    %cst_30 = arith.constant dense<0xFF800000> : vector<4xf32>
    %57 = vector.multi_reduction <maximumf>, %56, %cst_30 [1] : vector<4x4xf32> to vector<4xf32>
    %58 = vector.shape_cast %57 : vector<4xf32> to vector<4x1xf32>
    %59 = vector.broadcast %58 : vector<4x1xf32> to vector<4x4xf32>
    %60 = arith.subf %56, %59 : vector<4x4xf32>
    %61 = math.exp %60 : vector<4x4xf32>
    %cst_31 = arith.constant dense<0.000000e+00> : vector<4xf32>
    %62 = vector.multi_reduction <add>, %61, %cst_31 [1] : vector<4x4xf32> to vector<4xf32>
    %63 = vector.shape_cast %62 : vector<4xf32> to vector<4x1xf32>
    %64 = tpu.reciprocal %63 : vector<4x1xf32> -> vector<4x1xf32>
    %65 = vector.broadcast %64 : vector<4x1xf32> to vector<4x4xf32>
    %66 = arith.mulf %61, %65 : vector<4x4xf32>
    %67 = vector.extract_strided_slice %33 {offsets = [0, 12], sizes = [4, 4], strides = [1, 1]} : vector<4x16xf32> to vector<4x4xf32>
    %cst_32 = arith.constant dense<0xFF800000> : vector<4xf32>
    %68 = vector.multi_reduction <maximumf>, %67, %cst_32 [1] : vector<4x4xf32> to vector<4xf32>
    %69 = vector.shape_cast %68 : vector<4xf32> to vector<4x1xf32>
    %70 = vector.broadcast %69 : vector<4x1xf32> to vector<4x4xf32>
    %71 = arith.subf %67, %70 : vector<4x4xf32>
    %72 = math.exp %71 : vector<4x4xf32>
    %cst_33 = arith.constant dense<0.000000e+00> : vector<4xf32>
    %73 = vector.multi_reduction <add>, %72, %cst_33 [1] : vector<4x4xf32> to vector<4xf32>
    %74 = vector.shape_cast %73 : vector<4xf32> to vector<4x1xf32>
    %75 = tpu.reciprocal %74 : vector<4x1xf32> -> vector<4x1xf32>
    %76 = vector.broadcast %75 : vector<4x1xf32> to vector<4x4xf32>
    %77 = arith.mulf %72, %76 : vector<4x4xf32>
    %78 = tpu.concatenate %44, %55, %66, %77 in 1 : vector<4x4xf32>, vector<4x4xf32>, vector<4x4xf32>, vector<4x4xf32> -> vector<4x16xf32>
    %c0_34 = arith.constant 0 : index
    %c0_35 = arith.constant 0 : index
    %79 = vector.load %arg10[%c0_34, %c0_35] : memref<4x16xf32, #tpu.memory_space<vmem>>, vector<4x16xf32>
    tpu.vector_store %arg10[%c0_34, %c0_35], %78 {strides = array<i32>} : memref<4x16xf32, #tpu.memory_space<vmem>>, vector<4x16xf32>,
    return
  }
  func.func @transform_0(%arg0: i32) -> (i32, i32) {
    %c0_i32 = arith.constant 0 : i32
    %c0_i32_0 = arith.constant 0 : i32
    return %arg0, %c0_i32 : i32, i32
  }
  func.func @transform_1(%arg0: i32) -> (i32, i32) {
    %c0_i32 = arith.constant 0 : i32
    %c0_i32_0 = arith.constant 0 : i32
    return %arg0, %c0_i32 : i32, i32
  }
  func.func @transform_2(%arg0: i32) -> (i32, i32) {
    %c0_i32 = arith.constant 0 : i32
    %c0_i32_0 = arith.constant 0 : i32
    %c0_i32_1 = arith.constant 0 : i32
    return %c0_i32, %c0_i32_0 : i32, i32
  }
  func.func @transform_3(%arg0: i32) -> (i32, i32) {
    %c0_i32 = arith.constant 0 : i32
    %c0_i32_0 = arith.constant 0 : i32
    %c0_i32_1 = arith.constant 0 : i32
    return %c0_i32, %c0_i32_0 : i32, i32
  }
  func.func @transform_4(%arg0: i32) -> (i32, i32) {
    %c0_i32 = arith.constant 0 : i32
    %c0_i32_0 = arith.constant 0 : i32
    %c0_i32_1 = arith.constant 0 : i32
    return %c0_i32, %c0_i32_0 : i32, i32
  }
  func.func @transform_5(%arg0: i32) -> (i32, i32) {
    %c0_i32 = arith.constant 0 : i32
    %c0_i32_0 = arith.constant 0 : i32
    %c0_i32_1 = arith.constant 0 : i32
    return %c0_i32, %c0_i32_0 : i32, i32
  }
  func.func @transform_6(%arg0: i32) -> (i32, i32) {
    %c0_i32 = arith.constant 0 : i32
    %c0_i32_0 = arith.constant 0 : i32
    %c0_i32_1 = arith.constant 0 : i32
    return %c0_i32, %c0_i32_0 : i32, i32
  }
  func.func @transform_7(%arg0: i32) -> (i32, i32) {
    %c0_i32 = arith.constant 0 : i32
    %c0_i32_0 = arith.constant 0 : i32
    %c0_i32_1 = arith.constant 0 : i32
    return %c0_i32, %c0_i32_0 : i32, i32
  }
  func.func @transform_8(%arg0: i32) -> (i32, i32) {
    %c0_i32 = arith.constant 0 : i32
    %c0_i32_0 = arith.constant 0 : i32
    %c0_i32_1 = arith.constant 0 : i32
    return %c0_i32, %c0_i32_0 : i32, i32
  }
  func.func @transform_9(%arg0: i32) -> (i32, i32) {
    %c0_i32 = arith.constant 0 : i32
    %c0_i32_0 = arith.constant 0 : i32
    return %arg0, %c0_i32 : i32, i32
  }
}

</mosaic_0001>

<bundles_post_ra>
// kernel: tile.18
= control target key start
LH: loop header
LB: loop body
LE: loop exit
PB: predicated region body
PF: predicated region fallthrough
CT: control target
= control target key end

     0   :  { %s22_s0 = inlined_call_operand.vmem [shape: f32[32], index: 0, kind: input, shape index: {}]   ;;  %s23_s1 = inlined_call_operand.vmem [shape: f32[4,32], index: 1, kind: output, shape index: {}]  }
   0x1   :  { %v4_v0 = vld [vmem:[%s22_s0] ss:$0 sm:$0xff] }
   0x2   :  { %5 = vst [vmem:[%s23_s1] sm:$0xf] %v4_v0 }

// kernel: tile.19
= control target key start
LH: loop header
LB: loop body
LE: loop exit
PB: predicated region body
PF: predicated region fallthrough
CT: control target
= control target key end

     0   :  { %vm7_vm0 = vcmask 261120   ;;  %s37_s8 = smov 32   ;;  %s38_s9 = smov 64   ;;  %vm13_vm1 = vcmask 1048320   ;;  %vm19_vm2 = vcmask 785920   ;;  %vm25_vm3 = vcmask 523520   ;;  %s55_s0 = inlined_call_operand.vmem [shape: f32[4,32], index: 0, kind: input, shape index: {}]   ;;  %s56_s1 = inlined_call_operand.vmem [shape: f32[1,128], index: 1, kind: output, shape index: {}]  }
   0x1   :  { %v4_v0 = vld [vmem:[%s55_s0] sm:$0xf]  ;;  %s36_s0 = smov 96  }
   0x2   :  { %5 = vst [vmem:[#allocation1] sm:$0xf] %v4_v0 }
   0x9   :  { %v10_v1 = vld [vmem:[#allocation1 + $0x3] sm:$0x1]   ;;  %v22_v2 = vld [vmem:[#allocation1 + $0x1] sm:$0x1]   ;;  %v6_v3 = vld [vmem:[#allocation1] sm:$0x1]  }
   0xa   :  { %11 = vrot.lane.b32.xlu0 %v10_v1, %s36_s0  ;;  %23 = vrot.lane.b32.xlu1 %v22_v2, %s37_s8  ;;  %v16_v4 = vld [vmem:[#allocation1 + $0x2] sm:$0x1]   ;;  %8 = vst.msk [vmem:[#allocation0] sm:$0x1] %vm7_vm0, %v6_v3  }
   0xe   :  { %17 = vrot.lane.b32.xlu0 %v16_v4, %s38_s9 }
  0x7c   :  { %v12_v5 = vpop.permute.xlu0 %11   ;;  %v24_v6 = vpop.permute.xlu1 %23  }
  0x7d   :  { %14 = vst.msk [vmem:[#allocation0] sm:$0x1] %vm13_vm1, %v12_v5  }
  0x80   :  { %v18_v7 = vpop.permute.xlu0 %17  }
  0x81   :  { %20 = vst.msk [vmem:[#allocation0] sm:$0x1] %vm19_vm2, %v18_v7  }
  0x82   :  { %26 = vst.msk [vmem:[#allocation0] sm:$0x1] %vm25_vm3, %v24_v6  }
  0x89   :  { %v30_v8 = vld [vmem:[#allocation0] sm:$0x1] }
  0x8a   :  { %32 = vst [vmem:[%s56_s1] sm:$0x1] %v30_v8 }

// kernel: tile.28
= control target key start
LH: loop header
LB: loop body
LE: loop exit
PB: predicated region body
PF: predicated region fallthrough
CT: control target
= control target key end

     0   :  { %s22_s0 = inlined_call_operand.vmem [shape: f32[4], index: 0, kind: input, shape index: {}]   ;;  %s23_s1 = inlined_call_operand.vmem [shape: f32[4,4], index: 1, kind: output, shape index: {}]  }
   0x1   :  { %v4_v0 = vld [vmem:[%s22_s0] ss:$0 sm:$0xff] }
   0x2   :  { %5 = vst [vmem:[%s23_s1] sm:$0xf] %v4_v0 }

// kernel: tile.29
= control target key start
LH: loop header
LB: loop body
LE: loop exit
PB: predicated region body
PF: predicated region fallthrough
CT: control target
= control target key end

     0   :  { %vm7_vm0 = vcmask 31744   ;;  %s37_s8 = smov 4   ;;  %s38_s9 = smov 8   ;;  %vm13_vm1 = vcmask 130144   ;;  %vm19_vm2 = vcmask 97344   ;;  %vm25_vm3 = vcmask 64544   ;;  %s55_s0 = inlined_call_operand.vmem [shape: f32[4,4], index: 0, kind: input, shape index: {}]   ;;  %s56_s1 = inlined_call_operand.vmem [shape: f32[1,16], index: 1, kind: output, shape index: {}]  }
   0x1   :  { %v4_v0 = vld [vmem:[%s55_s0] sm:$0xf]  ;;  %s36_s0 = smov 12  }
   0x2   :  { %5 = vst [vmem:[#allocation1] sm:$0xf] %v4_v0 }
   0x9   :  { %v10_v1 = vld [vmem:[#allocation1 + $0x3] sm:$0x1]   ;;  %v22_v2 = vld [vmem:[#allocation1 + $0x1] sm:$0x1]   ;;  %v6_v3 = vld [vmem:[#allocation1] sm:$0x1]  }
   0xa   :  { %11 = vrot.lane.b32.xlu0 %v10_v1, %s36_s0  ;;  %23 = vrot.lane.b32.xlu1 %v22_v2, %s37_s8  ;;  %v16_v4 = vld [vmem:[#allocation1 + $0x2] sm:$0x1]   ;;  %8 = vst.msk [vmem:[#allocation0] sm:$0x1] %vm7_vm0, %v6_v3  }
   0xe   :  { %17 = vrot.lane.b32.xlu0 %v16_v4, %s38_s9 }
  0x7c   :  { %v12_v5 = vpop.permute.xlu0 %11   ;;  %v24_v6 = vpop.permute.xlu1 %23  }
  0x7d   :  { %14 = vst.msk [vmem:[#allocation0] sm:$0x1] %vm13_vm1, %v12_v5  }
  0x80   :  { %v18_v7 = vpop.permute.xlu0 %17  }
  0x81   :  { %20 = vst.msk [vmem:[#allocation0] sm:$0x1] %vm19_vm2, %v18_v7  }
  0x82   :  { %26 = vst.msk [vmem:[#allocation0] sm:$0x1] %vm25_vm3, %v24_v6  }
  0x89   :  { %v30_v8 = vld [vmem:[#allocation0] sm:$0x1] }
  0x8a   :  { %32 = vst [vmem:[%s56_s1] sm:$0x1] %v30_v8 }

// kernel: embedding_model_forward.1
= control target key start
LH: loop header
LB: loop body
LE: loop exit
PB: predicated region body
PF: predicated region fallthrough
CT: control target
= control target key end

     0   :  { %v1026_v0 = vmov 0.0|0.0   ;;  %vm1027_vm0 = vmmov 0   ;;  %v1028_v6 = vmov 0.0   ;;  %vm98_vm1 = vcmask 523264   ;;  %s1031_s27 = smov 116   ;;  %s1325_s2 = inlined_call_operand.vmem [shape: f32[64,128], index: 2, kind: input, shape index: {}]   ;;  %s1326_s4 = inlined_call_operand.vmem [shape: f32[128,128], index: 4, kind: input, shape index: {}]   ;;  %s1327_s0 = inlined_call_operand.vmem [shape: f32[4,64], index: 0, kind: input, shape index: {}]   ;;  %s1328_s1 = inlined_call_operand.vmem [shape: f32[4,64], index: 1, kind: input, shape index: {}]   ;;  %s1329_s3 = inlined_call_operand.vmem [shape: f32[1,128], index: 3, kind: input, shape index: {}]   ;;  %s1330_s7 = inlined_call_operand.vmem [shape: f32[128,16], index: 7, kind: input, shape index: {}]   ;;  %s1331_s6 = inlined_call_operand.vmem [shape: f32[128,16], index: 6, kind: input, shape index: {}]   ;;  %s1332_s5 = inlined_call_operand.vmem [shape: f32[1,128], index: 5, kind: input, shape index: {}]   ;;  %s1333_s8 = inlined_call_operand.vmem [shape: f32[1,16], index: 8, kind: input, shape index: {}]   ;;  %s1334_s9 = inlined_call_operand.vmem [shape: f32[4,16], index: 9, kind: output, shape index: {}]  }
   0x1   :  { %884 = vmatprep.subr.bf16.mxu1 %v1026_v0  ;;  %920 = vmatprep.subr.bf16.mxu0 %v1026_v0  ;;  %v32_v1 = vld [vmem:[%s1325_s2] sm:$0xff]  ;;  %v33_v2 = vld [vmem:[%s1325_s2 + $0x8] sm:$0xff]  ;;  %v34_v3 = vld [vmem:[%s1325_s2 + $0x10] sm:$0xff]  ;;  %vm587_vm2 = vcmask 126048   ;;  %vm555_vm3 = vcmask 60448   ;;  %vm571_vm4 = vcmask 93248  }
   0x2   :  { %v885_v4 = vpack.c.bf16 %v33_v2, %v32_v1  ;;  %v35_v5 = vld [vmem:[%s1325_s2 + $0x18] sm:$0xff]  ;;  %722 = vmatprep.mubr.msk.f32.mxu1 %vm1027_vm0, %v1028_v6  ;;  %776 = vmatprep.mubr.msk.f32.mxu0 %vm1027_vm0, %v1028_v6  ;;  %v36_v8 = vld [vmem:[%s1325_s2 + $0x20] sm:$0xff]  ;;  %v37_v9 = vld [vmem:[%s1325_s2 + $0x28] sm:$0xff]  ;;  %vm543_vm5 = vcmask 27648   ;;  %vm603_vm6 = vcmask 31744   ;;  %vm605_vm7 = vcmask 64512  }
   0x3   :  { %v888_v7 = vpack.c.bf16 %v35_v5, %v34_v3  ;;  %v891_v10 = vpack.c.bf16 %v37_v9, %v36_v8  ;;  %v38_v11 = vld [vmem:[%s1325_s2 + $0x30] sm:$0xff]  ;;  %v39_v12 = vld [vmem:[%s1325_s2 + $0x38] sm:$0xff]  ;;  %v40_v14 = vld [vmem:[%s1326_s4] sm:$0xff]  ;;  %vm607_vm8 = vcmask 97280   ;;  %vm609_vm9 = vcmask 125952  }
   0x4   :  { %886 = vmatpush3.bf16.msra.mxu1 %v885_v4  ;;  %922 = vmatpush3.bf16.msra.mxu0 %v885_v4  ;;  %v894_v13 = vpack.c.bf16 %v39_v12, %v38_v11  ;;  %v41_v15 = vld [vmem:[%s1326_s4 + $0x8] sm:$0xff]  ;;  %v91_v16 = vld [vmem:[%s1327_s0] sm:$0xf]  ;;  %v42_v19 = vld [vmem:[%s1326_s4 + $0x10] sm:$0xff] }
   0x5   :  { %887 = vmatprep.subr.bf16.mxu1 %v1026_v0  ;;  %923 = vmatprep.subr.bf16.mxu0 %v1026_v0  ;;  %v250_v17 = vld [vmem:[%s1328_s1] sm:$0xf]  ;;  %v897_v18 = vpack.c.bf16 %v41_v15, %v40_v14  ;;  %v43_v20 = vld [vmem:[%s1326_s4 + $0x18] sm:$0xff]  ;;  %v45_v23 = vld [vmem:[%s1326_s4 + $0x28] sm:$0xff] }
   0x6   :  { %v900_v21 = vpack.c.bf16 %v43_v20, %v42_v19  ;;  %v44_v22 = vld [vmem:[%s1326_s4 + $0x20] sm:$0xff]  ;;  %v46_v25 = vld [vmem:[%s1326_s4 + $0x30] sm:$0xff]  ;;  %v47_v26 = vld [vmem:[%s1326_s4 + $0x38] sm:$0xff] }
   0x7   :  { %v903_v24 = vpack.c.bf16 %v45_v23, %v44_v22  ;;  %v906_v27 = vpack.c.bf16 %v47_v26, %v46_v25  ;;  %v48_v28 = vld [vmem:[%s1326_s4 + $0x40] sm:$0xff]  ;;  %v49_v29 = vld [vmem:[%s1326_s4 + $0x48] sm:$0xff]  ;;  %v50_v31 = vld [vmem:[%s1326_s4 + $0x50] sm:$0xff] }
   0x8   :  { %889 = vmatpush3.bf16.msra.mxu1 %v888_v7  ;;  %925 = vmatpush3.bf16.msra.mxu0 %v888_v7  ;;  %v909_v30 = vpack.c.bf16 %v49_v29, %v48_v28  ;;  %v51_v32 = vld [vmem:[%s1326_s4 + $0x58] sm:$0xff]  ;;  %v52_v34 = vld [vmem:[%s1326_s4 + $0x60] sm:$0xff]  ;;  %v53_v35 = vld [vmem:[%s1326_s4 + $0x68] sm:$0xff] }
   0x9   :  { %890 = vmatprep.subr.bf16.mxu1 %v1026_v0  ;;  %926 = vmatprep.subr.bf16.mxu0 %v1026_v0  ;;  %v912_v33 = vpack.c.bf16 %v51_v32, %v50_v31  ;;  %v915_v36 = vpack.c.bf16 %v53_v35, %v52_v34  ;;  %v54_v37 = vld [vmem:[%s1326_s4 + $0x70] sm:$0xff]  ;;  %v55_v38 = vld [vmem:[%s1326_s4 + $0x78] sm:$0xff]  ;;  %v615_v40 = vld [vmem:[%s1329_s3] ss:$0 sm:$0xff] }
   0xa   :  { %v918_v39 = vpack.c.bf16 %v55_v38, %v54_v37  ;;  %v72_v41 = vld [vmem:[%s1330_s7] sm:$0xff]  ;;  %v73_v42 = vld [vmem:[%s1330_s7 + $0x8] sm:$0xff]  ;;  %v74_v53 = vld [vmem:[%s1330_s7 + $0x10] sm:$0xff] }
   0xb   :  { %v56_v43 = vld [vmem:[%s1331_s6] sm:$0xff]  ;;  %v57_v44 = vld [vmem:[%s1331_s6 + $0x8] sm:$0xff]  ;;  %v957_v51 = vpack.c.bf16 %v73_v42, %v72_v41  ;;  %v75_v56 = vld [vmem:[%s1330_s7 + $0x18] sm:$0xff] }
   0xc   :  { %892 = vmatpush3.bf16.msra.mxu1 %v891_v10  ;;  %928 = vmatpush3.bf16.msra.mxu0 %v891_v10  ;;  %v981_v52 = vpack.c.bf16 %v57_v44, %v56_v43  ;;  %v58_v57 = vld [vmem:[%s1331_s6 + $0x10] sm:$0xff]  ;;  %v59_v58 = vld [vmem:[%s1331_s6 + $0x18] sm:$0xff]  ;;  %v960_v59 = vpack.c.bf16 %v75_v56, %v74_v53  ;;  %v76_v61 = vld [vmem:[%s1330_s7 + $0x20] sm:$0xff] }
   0xd   :  { %893 = vmatprep.subr.bf16.mxu1 %v1026_v0  ;;  %929 = vmatprep.subr.bf16.mxu0 %v1026_v0  ;;  %v984_v60 = vpack.c.bf16 %v59_v58, %v58_v57  ;;  %v77_v62 = vld [vmem:[%s1330_s7 + $0x28] sm:$0xff]  ;;  %v60_v63 = vld [vmem:[%s1331_s6 + $0x20] sm:$0xff]  ;;  %v78_v4 = vld [vmem:[%s1330_s7 + $0x30] sm:$0xff] }
   0xe   :  { %v61_v1 = vld [vmem:[%s1331_s6 + $0x28] sm:$0xff]  ;;  %v963_v2 = vpack.c.bf16 %v77_v62, %v76_v61  ;;  %v79_v5 = vld [vmem:[%s1330_s7 + $0x38] sm:$0xff]  ;;  %v80_v10 = vld [vmem:[%s1330_s7 + $0x40] sm:$0xff] }
   0xf   :  { %v987_v3 = vpack.c.bf16 %v61_v1, %v60_v63  ;;  %v63_v7 = vld [vmem:[%s1331_s6 + $0x38] sm:$0xff]  ;;  %v966_v8 = vpack.c.bf16 %v79_v5, %v78_v4  ;;  %v81_v11 = vld [vmem:[%s1330_s7 + $0x48] sm:$0xff]  ;;  %v64_v12 = vld [vmem:[%s1331_s6 + $0x40] sm:$0xff] }
  0x10   :  { %895 = vmatpush3.bf16.msra.mxu1 %v894_v13  ;;  %931 = vmatpush3.bf16.msra.mxu0 %v894_v13  ;;  %v65_v13 = vld [vmem:[%s1331_s6 + $0x48] sm:$0xff]  ;;  %v969_v14 = vpack.c.bf16 %v81_v11, %v80_v10  ;;  %v67_v19 = vld [vmem:[%s1331_s6 + $0x58] sm:$0xff]  ;;  %v84_v22 = vld [vmem:[%s1330_s7 + $0x60] sm:$0xff] }
  0x11   :  { %896 = vmatprep.subr.bf16.mxu1 %v1026_v0  ;;  %932 = vmatprep.subr.bf16.mxu0 %v1026_v0  ;;  %v993_v15 = vpack.c.bf16 %v65_v13, %v64_v12  ;;  %v85_v23 = vld [vmem:[%s1330_s7 + $0x68] sm:$0xff]  ;;  %v86_v28 = vld [vmem:[%s1330_s7 + $0x70] sm:$0xff]  ;;  %v87_v29 = vld [vmem:[%s1330_s7 + $0x78] sm:$0xff] }
  0x12   :  { %v69_v25 = vld [vmem:[%s1331_s6 + $0x68] sm:$0xff]  ;;  %v975_v26 = vpack.c.bf16 %v85_v23, %v84_v22  ;;  %v978_v31 = vpack.c.bf16 %v87_v29, %v86_v28  ;;  %v71_v32 = vld [vmem:[%s1331_s6 + $0x78] sm:$0xff]  ;;  %v619_v43 = vld [vmem:[%s1333_s8] ss:$0 sm:$0xff]  ;;  %s1030_s8 = smov 120  }
  0x13   :  { %723 = vmatmul.mubr.msk.f32.vlgmr.msra.gmra.mrb[0].mxu1 %vm98_vm1, %v91_v16  ;;  %777 = vmatmul.mubr.msk.f32.vlgmr.msra.gmra.mrb[0].mxu0 %vm98_vm1, %v250_v17  ;;  %v82_v16 = vld [vmem:[%s1330_s7 + $0x50] sm:$0xff]  ;;  %v83_v17 = vld [vmem:[%s1330_s7 + $0x58] sm:$0xff] }
  0x14   :  { %898 = vmatpush3.bf16.msra.mxu1 %v897_v18  ;;  %934 = vmatpush3.bf16.msra.mxu0 %v897_v18  ;;  %v66_v18 = vld [vmem:[%s1331_s6 + $0x50] sm:$0xff]  ;;  %v972_v20 = vpack.c.bf16 %v83_v17, %v82_v16 }
  0x15   :  { %899 = vmatprep.subr.bf16.mxu1 %v1026_v0  ;;  %935 = vmatprep.subr.bf16.mxu0 %v1026_v0 }
  0x16   :  { %757 = vmatprep.mubr.msk.f32.mxu1 %vm1027_vm0, %v1028_v6  ;;  %811 = vmatprep.mubr.msk.f32.mxu0 %vm1027_vm0, %v1028_v6 }
  0x18   :  { %901 = vmatpush3.bf16.msra.mxu1 %v900_v21  ;;  %937 = vmatpush3.bf16.msra.mxu0 %v900_v21  ;;  %v996_v21 = vpack.c.bf16 %v67_v19, %v66_v18 }
  0x19   :  { %902 = vmatprep.subr.bf16.mxu1 %v1026_v0  ;;  %938 = vmatprep.subr.bf16.mxu0 %v1026_v0 }
  0x1c   :  { %904 = vmatpush3.bf16.msra.mxu1 %v903_v24  ;;  %940 = vmatpush3.bf16.msra.mxu0 %v903_v24  ;;  %v68_v24 = vld [vmem:[%s1331_s6 + $0x60] sm:$0xff] }
  0x1d   :  { %905 = vmatprep.subr.bf16.mxu1 %v1026_v0  ;;  %941 = vmatprep.subr.bf16.mxu0 %v1026_v0 }
  0x20   :  { %907 = vmatpush3.bf16.msra.mxu1 %v906_v27  ;;  %943 = vmatpush3.bf16.msra.mxu0 %v906_v27  ;;  %v999_v27 = vpack.c.bf16 %v69_v25, %v68_v24 }
  0x21   :  { %908 = vmatprep.subr.bf16.mxu1 %v1026_v0  ;;  %944 = vmatprep.subr.bf16.mxu0 %v1026_v0 }
  0x24   :  { %910 = vmatpush3.bf16.msra.mxu1 %v909_v30  ;;  %946 = vmatpush3.bf16.msra.mxu0 %v909_v30  ;;  %v70_v30 = vld [vmem:[%s1331_s6 + $0x70] sm:$0xff] }
  0x25   :  { %911 = vmatprep.subr.bf16.mxu1 %v1026_v0  ;;  %947 = vmatprep.subr.bf16.mxu0 %v1026_v0 }
  0x28   :  { %913 = vmatpush3.bf16.msra.mxu1 %v912_v33  ;;  %949 = vmatpush3.bf16.msra.mxu0 %v912_v33  ;;  %v1002_v33 = vpack.c.bf16 %v71_v32, %v70_v30 }
  0x29   :  { %914 = vmatprep.subr.bf16.mxu1 %v1026_v0  ;;  %950 = vmatprep.subr.bf16.mxu0 %v1026_v0 }
  0x2c   :  { %916 = vmatpush3.bf16.msra.mxu1 %v915_v36  ;;  %952 = vmatpush3.bf16.msra.mxu0 %v915_v36 }
  0x2d   :  { %917 = vmatprep.subr.bf16.mxu1 %v1026_v0  ;;  %953 = vmatprep.subr.bf16.mxu0 %v1026_v0 }
  0x30   :  { %919 = vmatpush3.bf16.msra.mxu1 %v918_v39  ;;  %955 = vmatpush3.bf16.msra.mxu0 %v918_v39 }
  0x31   :  { %956 = vmatprep.subr.bf16.mxu1 %v1026_v0  ;;  %980 = vmatprep.subr.bf16.mxu0 %v1026_v0 }
  0xe6   :  { %v168_v45 = vpop.f32.mrb[0].mxu1  ;;  %v320_v46 = vpop.f32.mrb[0].mxu0 }
  0xe7   :  { %v169_v47 = vadd.f32 %v615_v40, %v168_v45  ;;  %v321_v48 = vadd.f32 %v615_v40, %v320_v46  ;;  %v724_v49 = vpop.f32.mrb[1].mxu1  ;;  %v778_v50 = vpop.f32.mrb[1].mxu0 }
  0xe9   :  { %v172_v54 = vmax.f32 %v169_v47, 0.0  ;;  %v324_v55 = vmax.f32 %v321_v48, 0.0 }
  0xeb   :  { %758 = vmatmul.mubr.f32.vlgmr.msra.gmra.mrb[2].mxu1 %v172_v54  ;;  %812 = vmatmul.mubr.f32.vlgmr.msra.gmra.mrb[2].mxu0 %v324_v55 }
  0xec   :  { %958 = vmatpush3.bf16.msra.mxu1 %v957_v51  ;;  %982 = vmatpush3.bf16.msra.mxu0 %v981_v52 }
  0xed   :  { %959 = vmatprep.subr.bf16.mxu1 %v1026_v0  ;;  %983 = vmatprep.subr.bf16.mxu0 %v1026_v0 }
  0xee   :  { %846 = vmatprep.mubr.msk.f32.mxu1 %vm1027_vm0, %v1028_v6  ;;  %881 = vmatprep.mubr.msk.f32.mxu0 %vm1027_vm0, %v1028_v6  ;;  %v62_v6 = vld [vmem:[%s1331_s6 + $0x30] sm:$0xff] }
  0xef   :  { %v990_v9 = vpack.c.bf16 %v63_v7, %v62_v6 }
  0xf0   :  { %961 = vmatpush3.bf16.msra.mxu1 %v960_v59  ;;  %985 = vmatpush3.bf16.msra.mxu0 %v984_v60 }
  0xf1   :  { %962 = vmatprep.subr.bf16.mxu1 %v1026_v0  ;;  %986 = vmatprep.subr.bf16.mxu0 %v1026_v0 }
  0xf4   :  { %964 = vmatpush3.bf16.msra.mxu1 %v963_v2  ;;  %988 = vmatpush3.bf16.msra.mxu0 %v987_v3 }
  0xf5   :  { %965 = vmatprep.subr.bf16.mxu1 %v1026_v0  ;;  %989 = vmatprep.subr.bf16.mxu0 %v1026_v0 }
  0xf8   :  { %967 = vmatpush3.bf16.msra.mxu1 %v966_v8  ;;  %991 = vmatpush3.bf16.msra.mxu0 %v990_v9 }
  0xf9   :  { %968 = vmatprep.subr.bf16.mxu1 %v1026_v0  ;;  %992 = vmatprep.subr.bf16.mxu0 %v1026_v0 }
  0xfc   :  { %970 = vmatpush3.bf16.msra.mxu1 %v969_v14  ;;  %994 = vmatpush3.bf16.msra.mxu0 %v993_v15 }
  0xfd   :  { %971 = vmatprep.subr.bf16.mxu1 %v1026_v0  ;;  %995 = vmatprep.subr.bf16.mxu0 %v1026_v0 }
 0x100   :  { %973 = vmatpush3.bf16.msra.mxu1 %v972_v20  ;;  %997 = vmatpush3.bf16.msra.mxu0 %v996_v21 }
 0x101   :  { %974 = vmatprep.subr.bf16.mxu1 %v1026_v0  ;;  %998 = vmatprep.subr.bf16.mxu0 %v1026_v0 }
 0x104   :  { %976 = vmatpush3.bf16.msra.mxu1 %v975_v26  ;;  %1000 = vmatpush3.bf16.msra.mxu0 %v999_v27 }
 0x105   :  { %977 = vmatprep.subr.bf16.mxu1 %v1026_v0  ;;  %1001 = vmatprep.subr.bf16.mxu0 %v1026_v0  ;;  %v617_v0 = vld [vmem:[%s1332_s5] ss:$0 sm:$0xff]  ;;  %s1029_s5 = smov 124  }
 0x108   :  { %979 = vmatpush3.bf16.msra.mxu1 %v978_v31  ;;  %1003 = vmatpush3.bf16.msra.mxu0 %v1002_v33 }
 0x1be   :  { %v245_v34 = vpop.f32.mrb[2].mxu1  ;;  %v391_v35 = vpop.f32.mrb[2].mxu0 }
 0x1bf   :  { %v246_v36 = vadd.f32 %v617_v0, %v245_v34  ;;  %v392_v37 = vadd.f32 %v617_v0, %v391_v35  ;;  %v759_v38 = vpop.f32.mrb[3].mxu1  ;;  %v813_v39 = vpop.f32.mrb[3].mxu0 }
 0x1c1   :  { %v249_v40 = vmax.f32 %v246_v36, 0.0  ;;  %v395_v41 = vmax.f32 %v392_v37, 0.0 }
 0x1c3   :  { %847 = vmatmul.mubr.f32.vlgmr.msra.gmra.mrb[4].mxu1 %v395_v41  ;;  %882 = vmatmul.mubr.f32.vlgmr.msra.gmra.mrb[4].mxu0 %v249_v40 }
 0x296   :  { %v462_v42 = vpop.f32.mrb[4].mxu1  ;;  %v532_v44 = vpop.f32.mrb[4].mxu0 }
 0x297   :  { %v533_v45 = vadd.f32 %v532_v44, %v462_v42  ;;  %v848_v46 = vpop.f32.mrb[5].mxu1  ;;  %v883_v47 = vpop.f32.mrb[5].mxu0 }
 0x299   :  { %v542_v48 = vadd.f32 %v619_v43, %v533_v45 }
 0x29b   :  { %v588_v49 = vsel %vm587_vm2, %v542_v48, -inf  ;;  %v556_v50 = vsel %vm555_vm3, %v542_v48, -inf  ;;  %v572_v51 = vsel %vm571_vm4, %v542_v48, -inf  ;;  %v544_v52 = vsel %vm543_vm5, %v542_v48, -inf }
 0x29c   :  { %589 = vmax.xlane.f32.xlu1 %v588_v49  ;;  %557 = vmax.xlane.f32.xlu0 %v556_v50 }
 0x2a0   :  { %573 = vmax.xlane.f32.xlu0 %v572_v51  ;;  %545 = vmax.xlane.f32.xlu1 %v544_v52 }
 0x329   :  { %v558_v53 = vpop.xlane.xlu0 %557  ;;  %v590_v55 = vpop.xlane.xlu1 %589 }
 0x32a   :  { %v559_v54 = vsub.f32 %v542_v48, %v558_v53  ;;  %v591_v58 = vsub.f32 %v542_v48, %v590_v55 }
 0x32c   :  { %v560_v56 = vmul.f32 1.442695, %v559_v54  ;;  %v592_v61 = vmul.f32 1.442695, %v591_v58 }
 0x32d   :  { %v574_v57 = vpop.xlane.xlu0 %573  ;;  %v546_v2 = vpop.xlane.xlu1 %545 }
 0x32e   :  { %v575_v59 = vsub.f32 %v542_v48, %v574_v57  ;;  %1010 = vpow2.f32 %v560_v56  ;;  %v547_v3 = vsub.f32 %v542_v48, %v546_v2 }
 0x330   :  { %v576_v60 = vmul.f32 1.442695, %v575_v59  ;;  %v548_v4 = vmul.f32 1.442695, %v547_v3 }
 0x332   :  { %1012 = vpow2.f32 %v576_v60 }
 0x333   :  { %1014 = vpow2.f32 %v592_v61 }
 0x334   :  { %1016 = vpow2.f32 %v548_v4 }
 0x338   :  { %v1011_v62 = vpop.eup %1010 }
 0x339   :  { %563 = vrot.lane.b32.xlu0 %v1011_v62, %s1029_s5 }
 0x33c   :  { %v1013_v63 = vpop.eup %1012 }
 0x33d   :  { %579 = vrot.lane.b32.xlu1 %v1013_v63, %s1030_s8  ;;  %v1015_v1 = vpop.eup %1014 }
 0x33e   :  { %v1017_v5 = vpop.eup %1016 }
 0x33f   :  { %v550_v6 = vsel %vm543_vm5, %v1017_v5, 0.0 }
 0x341   :  { %595 = vrot.lane.b32.xlu1 %v1015_v1, %s1031_s27 }
 0x365   :  { %551 = vadd.xlane.f32.xlu1 %v550_v6 }
 0x3ab   :  { %v564_v7 = vpop.permute.xlu0 %563 }
 0x3ac   :  { %v566_v8 = vsel %vm543_vm5, %v564_v7, 0.0 }
 0x3ad   :  { %567 = vadd.xlane.f32.xlu0 %v566_v8 }
 0x3af   :  { %v580_v9 = vpop.permute.xlu1 %579 }
 0x3b0   :  { %v582_v10 = vsel %vm543_vm5, %v580_v9, 0.0 }
 0x3b1   :  { %583 = vadd.xlane.f32.xlu0 %v582_v10 }
 0x3b3   :  { %v596_v11 = vpop.permute.xlu1 %595 }
 0x3b4   :  { %v598_v12 = vsel %vm543_vm5, %v596_v11, 0.0 }
 0x3b5   :  { %599 = vadd.xlane.f32.xlu0 %v598_v12 }
 0x3f2   :  { %v552_v14 = vpop.xlane.xlu1 %551 }
 0x43a   :  { %v568_v13 = vpop.xlane.xlu0 %567 }
 0x43b   :  { %1018 = vrcp.f32 %v568_v13 }
 0x43c   :  { %1020 = vrcp.f32 %v552_v14 }
 0x43e   :  { %v584_v15 = vpop.xlane.xlu0 %583 }
 0x43f   :  { %1022 = vrcp.f32 %v584_v15 }
 0x442   :  { %v600_v16 = vpop.xlane.xlu0 %599 }
 0x443   :  { %1024 = vrcp.f32 %v600_v16 }
 0x445   :  { %v1019_v17 = vpop.eup %1018 }
 0x446   :  { %v1021_v18 = vpop.eup %1020  ;;  %v570_v20 = vmul.f32 %v1019_v17, %v1011_v62 }
 0x447   :  { %v554_v22 = vmul.f32 %v1021_v18, %v1017_v5 }
 0x449   :  { %v1023_v19 = vpop.eup %1022  ;;  %v604_v24 = vsel %vm603_vm6, %v554_v22, %v570_v20 }
 0x44a   :  { %v586_v21 = vmul.f32 %v1023_v19, %v1013_v63 }
 0x44c   :  { %v606_v26 = vsel %vm605_vm7, %v604_v24, %v586_v21 }
 0x44d   :  { %v1025_v23 = vpop.eup %1024 }
 0x44e   :  { %v602_v25 = vmul.f32 %v1025_v23, %v1015_v1 }
 0x450   :  { %v608_v27 = vsel %vm607_vm8, %v606_v26, %v602_v25 }
 0x451   :  { %610 = vst.msk [vmem:[%s1334_s9] sm:$0xf] %vm609_vm9, %v608_v27 }

</bundles_post_ra>
